<compile_context>
chip_gen: v7x
topology: tpu7x:2x2x1
jax: 0.10.0
libtpu: 0.0.40
codegen_flags: <defaults>
</compile_context>

<pallas_src>
import math
import functools

import jax
import jax.numpy as jnp
from jax.experimental import pallas as pl
from jax.experimental.pallas import tpu as pltpu


# HBM storage / MXU operand dtype for the Pallas kernels.  bf16 halves HBM traffic on the large
# gathered tensor and the spatial-feature intermediate and uses the native bf16 MXU path on
# v5e/v6e/v7x.  Set to jnp.float32 for bit-faithful comparison against an f32 reference.
_STORAGE_DTYPE = jnp.bfloat16

_LANE = 128        # TPU lane width (anchor-axis padding granularity)
_SUBLANE = 16      # channel padding granularity (bf16 packs 16 rows per vreg)


def _round_up(x, m):
    return (x + m - 1) // m * m


def _pick_tb(batch, per_batch_bytes, cap=4 * 1024 * 1024):
    # Largest divisor of `batch` whose input block stays under ~4 MiB (x2 pipeline buffers),
    # so the per-step x block is big (few grid steps) but bounded for 64 MiB-VMEM chips (v7x).
    for tb in range(batch, 0, -1):
        if batch % tb == 0 and tb * per_batch_bytes <= cap:
            return tb
    return 1


def _pick_lane_tile(total, target=2048):
    # Largest multiple of 128 dividing `total` (itself a multiple of 128), capped at `target`.
    if total <= target:
        return total
    best = 128
    t = 256
    while t <= target:
        if total % t == 0:
            best = t
        t += 128
    return best


# ----------------------------------------------------------------------------- Pallas kernels
def _spatial_kernel(x_ref, anch_ref, w_ref, wa_ref, sf_ref, st_ref, *,
                    mid_pad, nsample, s_pad, tb, aggregation, pooling):
    # x_ref:    (TB, 1, C_pad, K*S_pad)  bf16 gathered [neighbor_xyz ; features ; 0-pad], k-outer lanes
    # anch_ref: (TB, 1, 8, S_pad)        bf16 anchor xyz (channels 0:3), zero padded
    # w_ref:    (2*mid_pad, C_pad)       bf16 block-diagonal [Wd ; Wf]
    # wa_ref:   (mid_pad, 8)             bf16 Wd for the anchor branch
    # sf_ref:   (1, mid_pad, TB*S_pad)   bf16 out — pooled spatial features, lanes = (b, s)
    # st_ref:   (1, 1, mid_pad, 2)       f32 out — per-channel [sum, sum_sq] over this block's lanes
    w = w_ref[...]
    wa = wa_ref[...]
    sum_x = jnp.zeros((mid_pad, 1), jnp.float32)
    sum_x2 = jnp.zeros((mid_pad, 1), jnp.float32)
    for b in range(tb):
        x = x_ref[b, 0]                                                      # (C_pad, K*S_pad)
        # one fused MXU pass for both 1x1 spatial convs (block-diagonal weight)
        y = jnp.dot(w, x, preferred_element_type=jnp.float32)                # (2*mid_pad, K*S_pad)
        wa_anchor = jnp.dot(wa, anch_ref[b, 0],
                            preferred_element_type=jnp.float32)              # (mid_pad, S_pad)
        pooled = None
        for k in range(nsample):                                             # lane-aligned K-slice pooling
            d = y[:mid_pad, k * s_pad:(k + 1) * s_pad] - wa_anchor           # Wd@(neighbor - anchor)
            f = y[mid_pad:, k * s_pad:(k + 1) * s_pad]                       # Wf@features
            sfeat = d * f if aggregation == "multiplication" else d + f
            if pooled is None:
                pooled = sfeat
            elif pooling == "max":
                pooled = jnp.maximum(pooled, sfeat)
            else:
                pooled = pooled + sfeat
        if pooling == "avg":
            pooled = pooled * (1.0 / nsample)
        sf_ref[0, :, b * s_pad:(b + 1) * s_pad] = pooled.astype(sf_ref.dtype)  # lane-dense store
        # fused BatchNorm partial statistics (padded lanes are exactly zero -> contribute 0)
        sum_x = sum_x + jnp.sum(pooled, axis=1, keepdims=True)
        sum_x2 = sum_x2 + jnp.sum(pooled * pooled, axis=1, keepdims=True)
    st_ref[0, 0, :, 0:1] = sum_x
    st_ref[0, 0, :, 1:2] = sum_x2


def spatial_aggregate(x_all, anchors, w_spatial, w_anchor, *, ntime, tk, nsample, s_pad,
                      tb, aggregation, pooling):
    # x_all:   (B, T'*Tk, C_pad, K*S_pad)   anchors: (B, T', 8, S_pad)
    # returns  sf    (T', Tk*mid_pad, B*S_pad)        (bf16)
    #          stats (T'*Tk, B//TB, mid_pad, 2)       (f32, [sum, sum_sq])
    B = x_all.shape[0]
    c_pad = x_all.shape[2]
    ksp = x_all.shape[3]
    mid_pad = w_anchor.shape[0]
    bt = B // tb
    kern = functools.partial(_spatial_kernel, mid_pad=mid_pad, nsample=nsample, s_pad=s_pad,
                             tb=tb, aggregation=aggregation, pooling=pooling)
    # NOTE(v7x): with 2 TensorCores, an even grid product splits cleanly across cores.
    return pl.pallas_call(
        kern,
        out_shape=(jax.ShapeDtypeStruct((ntime, tk * mid_pad, B * s_pad), _STORAGE_DTYPE),
                   jax.ShapeDtypeStruct((ntime * tk, bt, mid_pad, 2), jnp.float32)),
        grid=(ntime, tk, bt),
        in_specs=[
            pl.BlockSpec((tb, 1, c_pad, ksp), lambda t, k, j: (j, t * tk + k, 0, 0)),
            pl.BlockSpec((tb, 1, 8, s_pad), lambda t, k, j: (j, t, 0, 0)),
            pl.BlockSpec((2 * mid_pad, c_pad), lambda t, k, j: (0, 0)),
            pl.BlockSpec((mid_pad, 8), lambda t, k, j: (0, 0)),
        ],
        out_specs=(
            pl.BlockSpec((1, mid_pad, tb * s_pad), lambda t, k, j: (t, k, j)),
            pl.BlockSpec((1, 1, mid_pad, 2), lambda t, k, j: (t * tk + k, j, 0, 0)),
        ),
        compiler_params=pltpu.CompilerParams(
            dimension_semantics=("parallel", "parallel", "parallel"),
            vmem_limit_bytes=32 * 1024 * 1024,
        ),
    )(x_all, anchors, w_spatial, w_anchor)


def _temporal_kernel(sf_ref, ss_ref, wt_ref, o_ref):
    # sf_ref: (1, Tk*mid_pad, TILE_N) bf16     ss_ref: (1, Tk*mid_pad, 2) f32 [scale, shift]
    # wt_ref: (C_out, Tk*mid_pad)     bf16     o_ref:  (1, C_out, TILE_N) f32
    x = sf_ref[0].astype(jnp.float32)
    ss = ss_ref[0]
    xn = jnp.maximum(x * ss[:, 0:1] + ss[:, 1:2], 0.0)                       # BN-apply + ReLU (f32 VPU)
    o_ref[0] = jnp.dot(wt_ref[...], xn.astype(wt_ref.dtype),
                       preferred_element_type=jnp.float32)                   # lane-dense (C_out, TILE_N)


def temporal_conv(sf, ss, wt, *, tile_n):
    # sf: (T', Tk*mid_pad, B*S_pad), ss: (T', Tk*mid_pad, 2), wt: (C_out, Tk*mid_pad)
    T, tkm, lanes = sf.shape
    c_out = wt.shape[0]
    return pl.pallas_call(
        _temporal_kernel,
        out_shape=jax.ShapeDtypeStruct((T, c_out, lanes), jnp.float32),
        grid=(T, lanes // tile_n),
        in_specs=[
            pl.BlockSpec((1, tkm, tile_n), lambda t, n: (t, 0, n)),
            pl.BlockSpec((1, tkm, 2), lambda t, n: (t, 0, 0)),
            pl.BlockSpec((c_out, tkm), lambda t, n: (0, 0)),
        ],
        out_specs=pl.BlockSpec((1, c_out, tile_n), lambda t, n: (t, 0, n)),
        compiler_params=pltpu.CompilerParams(
            dimension_semantics=("parallel", "parallel"),
            vmem_limit_bytes=32 * 1024 * 1024,
        ),
    )(sf, ss, wt)


# ----------------------------------------------------------------------------- JAX glue ops
def furthest_point_sample(xyz, nsamples):
    # xyz: (..., N, 3) -> (..., nsamples) int32 indices (pointnet2 semantics, starts at 0)
    batch_shape = xyz.shape[:-2]
    N = xyz.shape[-2]
    x = xyz.reshape((-1, N, 3))
    Bf = x.shape[0]
    min_d = jnp.full((Bf, N), 1e10, jnp.float32)
    farthest = jnp.zeros((Bf,), jnp.int32)
    chosen = [farthest]
    for _ in range(nsamples - 1):
        cur = jnp.take_along_axis(x, farthest[:, None, None], axis=1)        # (Bf, 1, 3)
        d = jnp.sum((x - cur) ** 2, axis=-1)                                 # (Bf, N)
        min_d = jnp.minimum(min_d, d)
        farthest = jnp.argmax(min_d, axis=-1).astype(jnp.int32)
        chosen.append(farthest)
    return jnp.stack(chosen, axis=1).reshape(batch_shape + (nsamples,))


def ball_query(radius, nsample, neighbor_xyz, anchor_xyz):
    # neighbor_xyz: (..., N, 3), anchor_xyz: (..., S, 3) -> (..., S, nsample) int32
    N = neighbor_xyz.shape[-2]
    d2 = jnp.sum((anchor_xyz[..., :, None, :] - neighbor_xyz[..., None, :, :]) ** 2, axis=-1)
    mask = d2 < radius * radius                                              # (..., S, N)
    ar = jnp.arange(N)
    key = jnp.where(mask, ar, N + ar)
    order = jnp.argsort(key, axis=-1)[..., :nsample]                         # first in-radius first
    cnt = jnp.sum(mask, axis=-1, keepdims=True)                              # (..., S, 1)
    slots = jnp.arange(nsample)
    idx = jnp.where(slots < cnt, order, order[..., :1])                      # pad with first hit
    idx = jnp.where(cnt > 0, idx, 0)                                         # no hit -> index 0
    return idx.astype(jnp.int32)


# ----------------------------------------------------------------------------- parameters
def init_pstconv_params(key, in_planes, mid_planes, out_planes, temporal_kernel_size):
    kd, kf, kt = jax.random.split(key, 3)
    gain = math.sqrt(2.0 / (1 + math.sqrt(5) ** 2))
    fan_s = in_planes + 3
    bound_s = math.sqrt(3.0) * gain / math.sqrt(fan_s)       # module's kaiming_uniform helper
    wd = jax.random.uniform(kd, (mid_planes, 3), jnp.float32, -bound_s, bound_s)
    wf = jax.random.uniform(kf, (mid_planes, in_planes), jnp.float32, -bound_s, bound_s)
    fan_t = temporal_kernel_size * mid_planes
    bound_t = math.sqrt(3.0) * gain / math.sqrt(fan_t)       # nn.Conv1d default init bound
    wt = jax.random.uniform(kt, (out_planes, fan_t), jnp.float32, -bound_t, bound_t)

    mid_pad = _round_up(mid_planes, _SUBLANE)
    c_pad = _round_up(3 + in_planes, _SUBLANE)
    # fused block-diagonal spatial weight (2*mid_pad, C_pad): rows [0:mid]->Wd (xyz cols 0:3),
    # rows [mid_pad:mid_pad+mid]->Wf (feature cols 3:3+Cin); padded rows/cols stay zero so
    # padded channels are exactly zero through the whole pipeline.
    w_spatial = jnp.zeros((2 * mid_pad, c_pad), jnp.float32)
    w_spatial = w_spatial.at[:mid_planes, :3].set(wd)
    w_spatial = w_spatial.at[mid_pad:mid_pad + mid_planes, 3:3 + in_planes].set(wf)
    # anchor branch weight (Wd again), channel-padded to 8
    w_anchor = jnp.zeros((mid_pad, 8), jnp.float32).at[:mid_planes, :3].set(wd)
    # temporal 1x1 conv weight expanded to the padded channel layout (zero cols for padding)
    w_temporal = jnp.zeros((out_planes, temporal_kernel_size, mid_pad), jnp.float32)
    w_temporal = w_temporal.at[:, :, :mid_planes].set(
        wt.reshape(out_planes, temporal_kernel_size, mid_planes))
    w_temporal = w_temporal.reshape(out_planes, temporal_kernel_size * mid_pad)
    return {"w_spatial": w_spatial.astype(_STORAGE_DTYPE),
            "w_anchor": w_anchor.astype(_STORAGE_DTYPE),
            "w_temporal": w_temporal.astype(_STORAGE_DTYPE)}


# ----------------------------------------------------------------------------- forward pass
def pstconv_forward(xyzs, features, params, *, radius, nsample, spatial_stride,
                    temporal_kernel_size, temporal_stride, temporal_padding,
                    padding_mode="zeros", spatial_aggregation="multiplication",
                    spatial_pooling="sum", batch_norm=True, bn_eps=1e-5):
    # xyzs: (B, L, N, 3), features: (B, L, Cin, N)  (PyTorch conventions)
    # TODO(synk): in_planes == 0 (no point features), conv bias terms, and BatchNorm eval-mode
    # running statistics are not implemented (training-mode per-frame batch stats, gamma=1, beta=0).
    B, L, N, _ = xyzs.shape
    Cin = features.shape[2]
    Tk = temporal_kernel_size
    trad = Tk // 2
    if Tk > 1 and temporal_stride > 1:
        assert (L + sum(temporal_padding) - Tk) % temporal_stride == 0

    p0, p1 = temporal_padding
    if padding_mode == "zeros":
        xyz_pad = jnp.concatenate(
            [jnp.zeros((B, p0, N, 3), xyzs.dtype), xyzs, jnp.zeros((B, p1, N, 3), xyzs.dtype)], 1)
        feat_pad = jnp.concatenate(
            [jnp.zeros((B, p0, Cin, N), features.dtype), features,
             jnp.zeros((B, p1, Cin, N), features.dtype)], 1)
    else:  # replicate
        xyz_pad = jnp.concatenate(
            [jnp.repeat(xyzs[:, :1], p0, 1), xyzs, jnp.repeat(xyzs[:, -1:], p1, 1)], 1)
        feat_pad = jnp.concatenate(
            [jnp.repeat(features[:, :1], p0, 1), features, jnp.repeat(features[:, -1:], p1, 1)], 1)

    Lp = L + p0 + p1
    S = N // spatial_stride
    mid_pad = params["w_anchor"].shape[0]
    c_pad = params["w_spatial"].shape[1]
    s_pad = _round_up(S, _LANE)          # anchor-axis padding -> 128-lane aligned slices/stores

    centers_py = list(range(trad, Lp - trad, temporal_stride))
    Tp = len(centers_py)
    centers = jnp.array(centers_py, jnp.int32)                               # (T',)
    frame_idx = centers[:, None] + jnp.arange(Tk, dtype=jnp.int32)[None, :] - trad   # (T', Tk)

    # --- anchors: one batched FPS over all output frames (data-dependent, JAX glue) ---
    center_xyz = jnp.take(xyz_pad, centers, axis=1)                          # (B, T', N, 3)
    anchor_idx = furthest_point_sample(center_xyz, S)                        # (B, T', S)
    anchor_xyz = jnp.take_along_axis(center_xyz, anchor_idx[..., None], axis=-2)  # (B, T', S, 3)

    # --- batched ball query over all (frame, offset) pairs (data-dependent, JAX glue) ---
    nbr_xyz = jnp.take(xyz_pad, frame_idx, axis=1)                           # (B, T', Tk, N, 3)
    idx = ball_query(radius, nsample, nbr_xyz, anchor_xyz[:, :, None])       # (B, T', Tk, S, K)

    # pad the anchor axis to S_pad; padded entries point at the all-zero sentinel point N, so
    # their gathered xyz/features (hence pooled spatial features) are exactly 0 and contribute
    # nothing to the fused BatchNorm statistics.
    idx_p = jnp.full((B, Tp, Tk, s_pad, nsample), N, jnp.int32)
    idx_p = idx_p.at[:, :, :, :S, :].set(idx)
    idx_p = jnp.swapaxes(idx_p, -1, -2)                                      # (B, T', Tk, K, S_pad)
    idx_flat = idx_p.reshape(B, Tp, Tk, 1, nsample * s_pad)

    # --- channel-major gather source (no transpose of the big gathered tensor is ever needed):
    #     channels = [xyz(3) ; features(Cin) ; zero pad], plus one all-zero point at index N. ---
    xyz_cm = jnp.transpose(xyz_pad, (0, 1, 3, 2))                            # (B, Lp, 3, N) tiny transpose
    src = jnp.concatenate(
        [xyz_cm, feat_pad, jnp.zeros((B, Lp, c_pad - 3 - Cin, N), xyz_cm.dtype)], axis=2)
    src = jnp.pad(src, ((0, 0), (0, 0), (0, 0), (0, 1))).astype(_STORAGE_DTYPE)  # (B, Lp, C_pad, N+1)

    nbr_cm = jnp.take(src, frame_idx, axis=1)                                # (B, T', Tk, C_pad, N+1)
    x_all = jnp.take_along_axis(nbr_cm, idx_flat, axis=-1)                   # (B, T', Tk, C_pad, K*S_pad)
    x_all = x_all.reshape(B, Tp * Tk, c_pad, nsample * s_pad)                # pure reshape

    anchors = jnp.zeros((B, Tp, 8, s_pad), _STORAGE_DTYPE)
    anchors = anchors.at[:, :, :3, :S].set(
        jnp.transpose(anchor_xyz, (0, 1, 3, 2)).astype(_STORAGE_DTYPE))

    per_batch_bytes = c_pad * nsample * s_pad * jnp.dtype(_STORAGE_DTYPE).itemsize
    tb = _pick_tb(B, per_batch_bytes)

    sf, stats = spatial_aggregate(
        x_all, anchors, params["w_spatial"], params["w_anchor"],
        ntime=Tp, tk=Tk, nsample=nsample, s_pad=s_pad, tb=tb,
        aggregation=spatial_aggregation, pooling=spatial_pooling)
    # sf: (T', Tk*mid_pad, B*S_pad) bf16,   stats: (T'*Tk, B//tb, mid_pad, 2) f32

    # --- BatchNorm1d training-mode batch statistics (gamma=1, beta=0), per output frame, per
    #     (offset, mid) channel, over the B*S valid samples.  Partial sums come straight from
    #     the spatial kernel (sf is never re-read from HBM for statistics). ---
    stats = stats.reshape(Tp, Tk, -1, mid_pad, 2).sum(axis=2)                # (T', Tk, mid_pad, 2)
    if batch_norm:
        cnt = float(B * S)
        mean = stats[..., 0] / cnt
        var = jnp.maximum(stats[..., 1] / cnt - mean * mean, 0.0)            # one-pass E[x^2]-E[x]^2
        scale = jax.lax.rsqrt(var + bn_eps)
        shift = -mean * scale
    else:
        scale = jnp.ones((Tp, Tk, mid_pad), jnp.float32)
        shift = jnp.zeros((Tp, Tk, mid_pad), jnp.float32)
    ss = jnp.stack([scale, shift], axis=-1).reshape(Tp, Tk * mid_pad, 2).astype(jnp.float32)

    tile_n = _pick_lane_tile(B * s_pad)
    y = temporal_conv(sf, ss, params["w_temporal"], tile_n=tile_n)           # (T', C_out, B*S_pad)

    c_out = params["w_temporal"].shape[0]
    y = y.reshape(Tp, c_out, B, s_pad)[..., :S]                              # drop anchor padding
    new_features = jnp.transpose(y, (2, 0, 1, 3))                            # (B, T', C_out, S)
    new_xyzs = anchor_xyz                                                    # (B, T', S, 3)
    return new_xyzs, new_features


# ----------------------------------------------------------------------------- demo / test
if __name__ == "__main__":
    # PSTConv(in_planes=4, mid_planes=8, out_planes=16, spatial_kernel_size=(0.9, 4),
    #         temporal_kernel_size=3, spatial_stride=2, temporal_stride=1,
    #         temporal_padding=[1, 1], padding_mode='zeros',
    #         spatial_aggregation='multiplication', spatial_pooling='sum',
    #         bias=False, batch_norm=True)
    B, L, N = 2, 4, 16
    in_planes, mid_planes, out_planes = 4, 8, 16
    radius, nsample = 0.9, 4
    temporal_kernel_size, spatial_stride, temporal_stride = 3, 2, 1
    temporal_padding = (1, 1)

    key = jax.random.PRNGKey(0)
    kx, kf, kp = jax.random.split(key, 3)
    xyzs = jax.random.uniform(kx, (B, L, N, 3), jnp.float32)                 # (B, L, N, 3)
    features = jax.random.normal(kf, (B, L, in_planes, N), jnp.float32)      # (B, L, Cin, N)
    params = init_pstconv_params(kp, in_planes, mid_planes, out_planes, temporal_kernel_size)

    fwd = jax.jit(functools.partial(
        pstconv_forward,
        radius=radius, nsample=nsample, spatial_stride=spatial_stride,
        temporal_kernel_size=temporal_kernel_size, temporal_stride=temporal_stride,
        temporal_padding=temporal_padding, padding_mode="zeros",
        spatial_aggregation="multiplication", spatial_pooling="sum", batch_norm=True))

    new_xyzs, new_features = fwd(xyzs, features, params)
    jax.block_until_ready((new_xyzs, new_features))

    n_out = (L + sum(temporal_padding) - 2 * (temporal_kernel_size // 2)
             + temporal_stride - 1) // temporal_stride
    assert new_xyzs.shape == (B, n_out, N // spatial_stride, 3), new_xyzs.shape
    assert new_features.shape == (B, n_out, out_planes, N // spatial_stride), new_features.shape
    assert bool(jnp.all(jnp.isfinite(new_features)))
    # TODO(synk): furthest_point_sample / ball_query index construction (data-dependent
    # argmax / argsort gathers) stays in plain JAX; all conv/aggregation/pooling/BN compute
    # runs in the two Pallas kernels.
    print("KERNEL_OK")
</pallas_src>

<mosaic_0001>
module attributes {stable_mosaic.version = 11 : i64} {
  func.func @_temporal_kernel(%arg0: i32, %arg1: i32, %arg2: memref<1x48x256xbf16, #tpu.memory_space<vmem>>, %arg3: memref<1x48x2xf32, #tpu.memory_space<vmem>>, %arg4: memref<16x48xbf16, #tpu.memory_space<vmem>>, %arg5: memref<1x16x256xf32, #tpu.memory_space<vmem>>) attributes {dimension_semantics = [#tpu.dimension_semantics<parallel>, #tpu.dimension_semantics<parallel>], iteration_bounds = array<i64: 4, 1>, scalar_prefetch = 0 : i64, scratch_operands = 0 : i64, tpu.core_type = #tpu.core_type<tc>, window_params = [{transform_indices = @transform_0, window_bounds = array<i64: 1, 48, 256>}, {transform_indices = @transform_1, window_bounds = array<i64: 1, 48, 2>}, {pipeline_mode = #tpu.pipeline_mode<synchronous>, transform_indices = @transform_2, window_bounds = array<i64: 16, 48>}, {transform_indices = @transform_3, window_bounds = array<i64: 1, 16, 256>}]} {
    %c0 = arith.constant 0 : index
    %c0_0 = arith.constant 0 : index
    %c0_1 = arith.constant 0 : index
    %0 = vector.load %arg2[%c0, %c0_0, %c0_1] : memref<1x48x256xbf16, #tpu.memory_space<vmem>>, vector<1x48x256xbf16>
    %1 = vector.shape_cast %0 : vector<1x48x256xbf16> to vector<48x256xbf16>
    %2 = arith.extf %1 : vector<48x256xbf16> to vector<48x256xf32>
    %c0_2 = arith.constant 0 : index
    %c0_3 = arith.constant 0 : index
    %c0_4 = arith.constant 0 : index
    %3 = vector.load %arg3[%c0_2, %c0_3, %c0_4] : memref<1x48x2xf32, #tpu.memory_space<vmem>>, vector<1x48x2xf32>
    %4 = vector.shape_cast %3 : vector<1x48x2xf32> to vector<48x2xf32>
    %5 = vector.extract_strided_slice %4 {offsets = [0, 0], sizes = [48, 1], strides = [1, 1]} : vector<48x2xf32> to vector<48x1xf32>
    %6 = vector.broadcast %5 : vector<48x1xf32> to vector<48x256xf32>
    %7 = arith.mulf %2, %6 : vector<48x256xf32>
    %8 = vector.extract_strided_slice %4 {offsets = [0, 1], sizes = [48, 1], strides = [1, 1]} : vector<48x2xf32> to vector<48x1xf32>
    %9 = vector.broadcast %8 : vector<48x1xf32> to vector<48x256xf32>
    %10 = arith.addf %7, %9 : vector<48x256xf32>
    %cst = arith.constant 0.000000e+00 : f32
    %11 = vector.broadcast %cst : f32 to vector<48x256xf32>
    %12 = arith.maximumf %10, %11 : vector<48x256xf32>
    %c0_5 = arith.constant 0 : index
    %c0_6 = arith.constant 0 : index
    %13 = vector.load %arg4[%c0_5, %c0_6] : memref<16x48xbf16, #tpu.memory_space<vmem>>, vector<16x48xbf16>
    %14 = arith.truncf %12 : vector<48x256xf32> to vector<48x256xbf16>
    %cst_7 = arith.constant dense<0.000000e+00> : vector<16x256xf32>
    %15 = tpu.matmul %13, %14, %cst_7 {dimension_numbers = #tpu.dot_dimension_numbers<[1], [0], [0], [1], [0, 0, 1, 1], [], []>} : vector<16x48xbf16>, vector<48x256xbf16>, vector<16x256xf32> -> vector<16x256xf32>
    %c0_8 = arith.constant 0 : index
    %c0_9 = arith.constant 0 : index
    %c0_10 = arith.constant 0 : index
    %16 = vector.load %arg5[%c0_8, %c0_9, %c0_10] : memref<1x16x256xf32, #tpu.memory_space<vmem>>, vector<1x16x256xf32>
    %17 = vector.shape_cast %16 : vector<1x16x256xf32> to vector<16x256xf32>
    %18 = vector.shape_cast %15 : vector<16x256xf32> to vector<1x16x256xf32>
    tpu.vector_store %arg5[%c0_8, %c0_9, %c0_10], %18 {strides = array<i32>} : memref<1x16x256xf32, #tpu.memory_space<vmem>>, vector<1x16x256xf32>,
    return
  }
  func.func @transform_0(%arg0: i32, %arg1: i32) -> (i32, i32, i32) {
    %c0_i32 = arith.constant 0 : i32
    %c0_i32_0 = arith.constant 0 : i32
    return %arg0, %c0_i32, %arg1 : i32, i32, i32
  }
  func.func @transform_1(%arg0: i32, %arg1: i32) -> (i32, i32, i32) {
    %c0_i32 = arith.constant 0 : i32
    %c0_i32_0 = arith.constant 0 : i32
    %c0_i32_1 = arith.constant 0 : i32
    return %arg0, %c0_i32, %c0_i32_0 : i32, i32, i32
  }
  func.func @transform_2(%arg0: i32, %arg1: i32) -> (i32, i32) {
    %c0_i32 = arith.constant 0 : i32
    %c0_i32_0 = arith.constant 0 : i32
    %c0_i32_1 = arith.constant 0 : i32
    return %c0_i32, %c0_i32_0 : i32, i32
  }
  func.func @transform_3(%arg0: i32, %arg1: i32) -> (i32, i32, i32) {
    %c0_i32 = arith.constant 0 : i32
    %c0_i32_0 = arith.constant 0 : i32
    return %arg0, %c0_i32, %arg1 : i32, i32, i32
  }
}

module attributes {stable_mosaic.version = 11 : i64} {
  func.func @_spatial_kernel(%arg0: i32, %arg1: i32, %arg2: i32, %arg3: memref<2x1x16x512xbf16, #tpu.memory_space<vmem>>, %arg4: memref<2x1x8x128xbf16, #tpu.memory_space<vmem>>, %arg5: memref<32x16xbf16, #tpu.memory_space<vmem>>, %arg6: memref<16x8xbf16, #tpu.memory_space<vmem>>, %arg7: memref<1x16x256xbf16, #tpu.memory_space<vmem>>, %arg8: memref<1x1x16x2xf32, #tpu.memory_space<vmem>>) attributes {dimension_semantics = [#tpu.dimension_semantics<parallel>, #tpu.dimension_semantics<parallel>, #tpu.dimension_semantics<parallel>], iteration_bounds = array<i64: 4, 3, 1>, scalar_prefetch = 0 : i64, scratch_operands = 0 : i64, tpu.core_type = #tpu.core_type<tc>, window_params = [{transform_indices = @transform_0, window_bounds = array<i64: 2, 1, 16, 512>}, {transform_indices = @transform_1, window_bounds = array<i64: 2, 1, 8, 128>}, {pipeline_mode = #tpu.pipeline_mode<synchronous>, transform_indices = @transform_2, window_bounds = array<i64: 32, 16>}, {pipeline_mode = #tpu.pipeline_mode<synchronous>, transform_indices = @transform_3, window_bounds = array<i64: 16, 8>}, {transform_indices = @transform_4, window_bounds = array<i64: 1, 16, 256>}, {transform_indices = @transform_5, window_bounds = array<i64: 1, 1, 16, 2>}]} {
    %c0 = arith.constant 0 : index
    %c0_0 = arith.constant 0 : index
    %0 = vector.load %arg5[%c0, %c0_0] : memref<32x16xbf16, #tpu.memory_space<vmem>>, vector<32x16xbf16>
    %c0_1 = arith.constant 0 : index
    %c0_2 = arith.constant 0 : index
    %1 = vector.load %arg6[%c0_1, %c0_2] : memref<16x8xbf16, #tpu.memory_space<vmem>>, vector<16x8xbf16>
    %cst = arith.constant 0.000000e+00 : f32
    %2 = vector.broadcast %cst : f32 to vector<16x1xf32>
    %cst_3 = arith.constant 0.000000e+00 : f32
    %3 = vector.broadcast %cst_3 : f32 to vector<16x1xf32>
    %c0_4 = arith.constant 0 : index
    %c0_5 = arith.constant 0 : index
    %c0_6 = arith.constant 0 : index
    %c0_7 = arith.constant 0 : index
    %4 = vector.load %arg3[%c0_4, %c0_5, %c0_6, %c0_7] : memref<2x1x16x512xbf16, #tpu.memory_space<vmem>>, vector<1x1x16x512xbf16>
    %5 = vector.shape_cast %4 : vector<1x1x16x512xbf16> to vector<16x512xbf16>
    %cst_8 = arith.constant dense<0.000000e+00> : vector<32x512xf32>
    %6 = tpu.matmul %0, %5, %cst_8 {dimension_numbers = #tpu.dot_dimension_numbers<[1], [0], [0], [1], [0, 0, 1, 1], [], []>} : vector<32x16xbf16>, vector<16x512xbf16>, vector<32x512xf32> -> vector<32x512xf32>
    %c0_9 = arith.constant 0 : index
    %c0_10 = arith.constant 0 : index
    %c0_11 = arith.constant 0 : index
    %c0_12 = arith.constant 0 : index
    %7 = vector.load %arg4[%c0_9, %c0_10, %c0_11, %c0_12] : memref<2x1x8x128xbf16, #tpu.memory_space<vmem>>, vector<1x1x8x128xbf16>
    %8 = vector.shape_cast %7 : vector<1x1x8x128xbf16> to vector<8x128xbf16>
    %cst_13 = arith.constant dense<0.000000e+00> : vector<16x128xf32>
    %9 = tpu.matmul %1, %8, %cst_13 {dimension_numbers = #tpu.dot_dimension_numbers<[1], [0], [0], [1], [0, 0, 1, 1], [], []>} : vector<16x8xbf16>, vector<8x128xbf16>, vector<16x128xf32> -> vector<16x128xf32>
    %10 = vector.extract_strided_slice %6 {offsets = [0, 0], sizes = [16, 128], strides = [1, 1]} : vector<32x512xf32> to vector<16x128xf32>
    %11 = arith.subf %10, %9 : vector<16x128xf32>
    %12 = vector.extract_strided_slice %6 {offsets = [16, 0], sizes = [16, 128], strides = [1, 1]} : vector<32x512xf32> to vector<16x128xf32>
    %13 = arith.mulf %11, %12 : vector<16x128xf32>
    %14 = vector.extract_strided_slice %6 {offsets = [0, 128], sizes = [16, 128], strides = [1, 1]} : vector<32x512xf32> to vector<16x128xf32>
    %15 = arith.subf %14, %9 : vector<16x128xf32>
    %16 = vector.extract_strided_slice %6 {offsets = [16, 128], sizes = [16, 128], strides = [1, 1]} : vector<32x512xf32> to vector<16x128xf32>
    %17 = arith.mulf %15, %16 : vector<16x128xf32>
    %18 = arith.addf %13, %17 : vector<16x128xf32>
    %19 = vector.extract_strided_slice %6 {offsets = [0, 256], sizes = [16, 128], strides = [1, 1]} : vector<32x512xf32> to vector<16x128xf32>
    %20 = arith.subf %19, %9 : vector<16x128xf32>
    %21 = vector.extract_strided_slice %6 {offsets = [16, 256], sizes = [16, 128], strides = [1, 1]} : vector<32x512xf32> to vector<16x128xf32>
    %22 = arith.mulf %20, %21 : vector<16x128xf32>
    %23 = arith.addf %18, %22 : vector<16x128xf32>
    %24 = vector.extract_strided_slice %6 {offsets = [0, 384], sizes = [16, 128], strides = [1, 1]} : vector<32x512xf32> to vector<16x128xf32>
    %25 = arith.subf %24, %9 : vector<16x128xf32>
    %26 = vector.extract_strided_slice %6 {offsets = [16, 384], sizes = [16, 128], strides = [1, 1]} : vector<32x512xf32> to vector<16x128xf32>
    %27 = arith.mulf %25, %26 : vector<16x128xf32>
    %28 = arith.addf %23, %27 : vector<16x128xf32>
    %29 = arith.truncf %28 : vector<16x128xf32> to vector<16x128xbf16>
    %c0_14 = arith.constant 0 : index
    %c0_15 = arith.constant 0 : index
    %c0_16 = arith.constant 0 : index
    %30 = vector.load %arg7[%c0_14, %c0_15, %c0_16] : memref<1x16x256xbf16, #tpu.memory_space<vmem>>, vector<1x16x128xbf16>
    %31 = vector.shape_cast %30 : vector<1x16x128xbf16> to vector<16x128xbf16>
    %32 = vector.shape_cast %29 : vector<16x128xbf16> to vector<1x16x128xbf16>
    tpu.vector_store %arg7[%c0_14, %c0_15, %c0_16], %32 {strides = array<i32>} : memref<1x16x256xbf16, #tpu.memory_space<vmem>>, vector<1x16x128xbf16>,
    %cst_17 = arith.constant dense<0.000000e+00> : vector<16xf32>
    %33 = vector.multi_reduction <add>, %28, %cst_17 [1] : vector<16x128xf32> to vector<16xf32>
    %34 = vector.shape_cast %33 : vector<16xf32> to vector<16x1xf32>
    %35 = arith.addf %2, %34 : vector<16x1xf32>
    %36 = arith.mulf %28, %28 : vector<16x128xf32>
    %cst_18 = arith.constant dense<0.000000e+00> : vector<16xf32>
    %37 = vector.multi_reduction <add>, %36, %cst_18 [1] : vector<16x128xf32> to vector<16xf32>
    %38 = vector.shape_cast %37 : vector<16xf32> to vector<16x1xf32>
    %39 = arith.addf %3, %38 : vector<16x1xf32>
    %c1 = arith.constant 1 : index
    %c0_19 = arith.constant 0 : index
    %c0_20 = arith.constant 0 : index
    %c0_21 = arith.constant 0 : index
    %40 = vector.load %arg3[%c1, %c0_19, %c0_20, %c0_21] : memref<2x1x16x512xbf16, #tpu.memory_space<vmem>>, vector<1x1x16x512xbf16>
    %41 = vector.shape_cast %40 : vector<1x1x16x512xbf16> to vector<16x512xbf16>
    %cst_22 = arith.constant dense<0.000000e+00> : vector<32x512xf32>
    %42 = tpu.matmul %0, %41, %cst_22 {dimension_numbers = #tpu.dot_dimension_numbers<[1], [0], [0], [1], [0, 0, 1, 1], [], []>} : vector<32x16xbf16>, vector<16x512xbf16>, vector<32x512xf32> -> vector<32x512xf32>
    %c1_23 = arith.constant 1 : index
    %c0_24 = arith.constant 0 : index
    %c0_25 = arith.constant 0 : index
    %c0_26 = arith.constant 0 : index
    %43 = vector.load %arg4[%c1_23, %c0_24, %c0_25, %c0_26] : memref<2x1x8x128xbf16, #tpu.memory_space<vmem>>, vector<1x1x8x128xbf16>
    %44 = vector.shape_cast %43 : vector<1x1x8x128xbf16> to vector<8x128xbf16>
    %cst_27 = arith.constant dense<0.000000e+00> : vector<16x128xf32>
    %45 = tpu.matmul %1, %44, %cst_27 {dimension_numbers = #tpu.dot_dimension_numbers<[1], [0], [0], [1], [0, 0, 1, 1], [], []>} : vector<16x8xbf16>, vector<8x128xbf16>, vector<16x128xf32> -> vector<16x128xf32>
    %46 = vector.extract_strided_slice %42 {offsets = [0, 0], sizes = [16, 128], strides = [1, 1]} : vector<32x512xf32> to vector<16x128xf32>
    %47 = arith.subf %46, %45 : vector<16x128xf32>
    %48 = vector.extract_strided_slice %42 {offsets = [16, 0], sizes = [16, 128], strides = [1, 1]} : vector<32x512xf32> to vector<16x128xf32>
    %49 = arith.mulf %47, %48 : vector<16x128xf32>
    %50 = vector.extract_strided_slice %42 {offsets = [0, 128], sizes = [16, 128], strides = [1, 1]} : vector<32x512xf32> to vector<16x128xf32>
    %51 = arith.subf %50, %45 : vector<16x128xf32>
    %52 = vector.extract_strided_slice %42 {offsets = [16, 128], sizes = [16, 128], strides = [1, 1]} : vector<32x512xf32> to vector<16x128xf32>
    %53 = arith.mulf %51, %52 : vector<16x128xf32>
    %54 = arith.addf %49, %53 : vector<16x128xf32>
    %55 = vector.extract_strided_slice %42 {offsets = [0, 256], sizes = [16, 128], strides = [1, 1]} : vector<32x512xf32> to vector<16x128xf32>
    %56 = arith.subf %55, %45 : vector<16x128xf32>
    %57 = vector.extract_strided_slice %42 {offsets = [16, 256], sizes = [16, 128], strides = [1, 1]} : vector<32x512xf32> to vector<16x128xf32>
    %58 = arith.mulf %56, %57 : vector<16x128xf32>
    %59 = arith.addf %54, %58 : vector<16x128xf32>
    %60 = vector.extract_strided_slice %42 {offsets = [0, 384], sizes = [16, 128], strides = [1, 1]} : vector<32x512xf32> to vector<16x128xf32>
    %61 = arith.subf %60, %45 : vector<16x128xf32>
    %62 = vector.extract_strided_slice %42 {offsets = [16, 384], sizes = [16, 128], strides = [1, 1]} : vector<32x512xf32> to vector<16x128xf32>
    %63 = arith.mulf %61, %62 : vector<16x128xf32>
    %64 = arith.addf %59, %63 : vector<16x128xf32>
    %65 = arith.truncf %64 : vector<16x128xf32> to vector<16x128xbf16>
    %c0_28 = arith.constant 0 : index
    %c0_29 = arith.constant 0 : index
    %c128 = arith.constant 128 : index
    %66 = vector.load %arg7[%c0_28, %c0_29, %c128] : memref<1x16x256xbf16, #tpu.memory_space<vmem>>, vector<1x16x128xbf16>
    %67 = vector.shape_cast %66 : vector<1x16x128xbf16> to vector<16x128xbf16>
    %68 = vector.shape_cast %65 : vector<16x128xbf16> to vector<1x16x128xbf16>
    tpu.vector_store %arg7[%c0_28, %c0_29, %c128], %68 {strides = array<i32>} : memref<1x16x256xbf16, #tpu.memory_space<vmem>>, vector<1x16x128xbf16>,
    %cst_30 = arith.constant dense<0.000000e+00> : vector<16xf32>
    %69 = vector.multi_reduction <add>, %64, %cst_30 [1] : vector<16x128xf32> to vector<16xf32>
    %70 = vector.shape_cast %69 : vector<16xf32> to vector<16x1xf32>
    %71 = arith.addf %35, %70 : vector<16x1xf32>
    %72 = arith.mulf %64, %64 : vector<16x128xf32>
    %cst_31 = arith.constant dense<0.000000e+00> : vector<16xf32>
    %73 = vector.multi_reduction <add>, %72, %cst_31 [1] : vector<16x128xf32> to vector<16xf32>
    %74 = vector.shape_cast %73 : vector<16xf32> to vector<16x1xf32>
    %75 = arith.addf %39, %74 : vector<16x1xf32>
    %c0_32 = arith.constant 0 : index
    %c0_33 = arith.constant 0 : index
    %c0_34 = arith.constant 0 : index
    %c0_35 = arith.constant 0 : index
    %76 = vector.load %arg8[%c0_32, %c0_33, %c0_34, %c0_35] : memref<1x1x16x2xf32, #tpu.memory_space<vmem>>, vector<1x1x16x1xf32>
    %77 = vector.shape_cast %76 : vector<1x1x16x1xf32> to vector<16x1xf32>
    %78 = vector.shape_cast %71 : vector<16x1xf32> to vector<1x1x16x1xf32>
    tpu.vector_store %arg8[%c0_32, %c0_33, %c0_34, %c0_35], %78 {strides = array<i32>} : memref<1x1x16x2xf32, #tpu.memory_space<vmem>>, vector<1x1x16x1xf32>,
    %c0_36 = arith.constant 0 : index
    %c0_37 = arith.constant 0 : index
    %c0_38 = arith.constant 0 : index
    %c1_39 = arith.constant 1 : index
    %79 = vector.load %arg8[%c0_36, %c0_37, %c0_38, %c1_39] : memref<1x1x16x2xf32, #tpu.memory_space<vmem>>, vector<1x1x16x1xf32>
    %80 = vector.shape_cast %79 : vector<1x1x16x1xf32> to vector<16x1xf32>
    %81 = vector.shape_cast %75 : vector<16x1xf32> to vector<1x1x16x1xf32>
    tpu.vector_store %arg8[%c0_36, %c0_37, %c0_38, %c1_39], %81 {strides = array<i32>} : memref<1x1x16x2xf32, #tpu.memory_space<vmem>>, vector<1x1x16x1xf32>,
    return
  }
  func.func @transform_0(%arg0: i32, %arg1: i32, %arg2: i32) -> (i32, i32, i32, i32) {
    %c3_i32 = arith.constant 3 : i32
    %0 = arith.muli %arg0, %c3_i32 : i32
    %1 = arith.addi %0, %arg1 : i32
    %c0_i32 = arith.constant 0 : i32
    %c0_i32_0 = arith.constant 0 : i32
    %c0_i32_1 = arith.constant 0 : i32
    return %arg2, %1, %c0_i32, %c0_i32_0 : i32, i32, i32, i32
  }
  func.func @transform_1(%arg0: i32, %arg1: i32, %arg2: i32) -> (i32, i32, i32, i32) {
    %c0_i32 = arith.constant 0 : i32
    %c0_i32_0 = arith.constant 0 : i32
    %c0_i32_1 = arith.constant 0 : i32
    return %arg2, %arg0, %c0_i32, %c0_i32_0 : i32, i32, i32, i32
  }
  func.func @transform_2(%arg0: i32, %arg1: i32, %arg2: i32) -> (i32, i32) {
    %c0_i32 = arith.constant 0 : i32
    %c0_i32_0 = arith.constant 0 : i32
    %c0_i32_1 = arith.constant 0 : i32
    return %c0_i32, %c0_i32_0 : i32, i32
  }
  func.func @transform_3(%arg0: i32, %arg1: i32, %arg2: i32) -> (i32, i32) {
    %c0_i32 = arith.constant 0 : i32
    %c0_i32_0 = arith.constant 0 : i32
    %c0_i32_1 = arith.constant 0 : i32
    return %c0_i32, %c0_i32_0 : i32, i32
  }
  func.func @transform_4(%arg0: i32, %arg1: i32, %arg2: i32) -> (i32, i32, i32) {
    %c0_i32 = arith.constant 0 : i32
    return %arg0, %arg1, %arg2 : i32, i32, i32
  }
  func.func @transform_5(%arg0: i32, %arg1: i32, %arg2: i32) -> (i32, i32, i32, i32) {
    %c3_i32 = arith.constant 3 : i32
    %0 = arith.muli %arg0, %c3_i32 : i32
    %1 = arith.addi %0, %arg1 : i32
    %c0_i32 = arith.constant 0 : i32
    %c0_i32_0 = arith.constant 0 : i32
    %c0_i32_1 = arith.constant 0 : i32
    return %1, %arg2, %c0_i32, %c0_i32_0 : i32, i32, i32, i32
  }
}

</mosaic_0001>

<bundles_post_ra>
// kernel: pstconv_forward.3
= control target key start
LH: loop header
LB: loop body
LE: loop exit
PB: predicated region body
PF: predicated region fallthrough
CT: control target
= control target key end

     0   :  { %s605_s12 = smov 0   ;;  %s607_s13 = smov 0   ;;  %s656_s0 = inlined_call_operand.vmem [shape: bf16[4,48,256], index: 0, kind: input, shape index: {}]   ;;  %s657_s1 = inlined_call_operand.vmem [shape: f32[4,48,2], index: 1, kind: input, shape index: {}]   ;;  %s658_s2 = inlined_call_operand.vmem [shape: bf16[16,48], index: 2, kind: input, shape index: {}]   ;;  %s659_s3 = inlined_call_operand.vmem [shape: f32[4,16,256], index: 3, kind: output, shape index: {}]  }
   0x1   :  { %s609_s14 = smov 0  }
   0x2 LB: > { %s25_s15 = sadd.s32 1, %s577_s13  ;;  %p512_p0 = scmp.ge.s32.totalorder %s581_s14, 1  ;;  %s581_s14 = sphi %s609_s14, %s13_s14   ;;  %s577_s13 = sphi %s607_s13, %s661_s13   ;;  %s573_s12 = sphi %s605_s12, %s660_s12  }
   0x3   : > { %p27_p1 = scmp.ge.s32.totalorder %s25_s15, 4  ;;  %p168_p2 = scmp.lt.s32.totalorder %s581_s14, 5 }
   0x5   : > { %s663_s15 = smov (%p27_p1, %s25_s15), 0  ;;  %p169_p3 = pnand %p512_p0, %p168_p2 }
   0x6   : > { %p206_p4 = scmp.lt.s32.totalorder (!%p169_p3), %s573_s12, 3  ;;  %v583_v0 = vmov (!%p169_p3), 1   ;;  %v584_v1 = vmov (!%p169_p3), 0   ;;  %vm358_vm0 = vcmask (!%p169_p3), 392192  }
   0x7   : > { %172 = sbr.rel (%p169_p3) target bundleno = 401 (0x191), region = 32  ;;  %550 = vset.pattern.permute.xlu1 (!%p169_p3), %v583_v0  ;;  %549 = vset.pattern.permute.xlu0 (!%p169_p3), %v584_v1 }
   0x8   : > { %394 = vmatprep.mubr.bf16.mxu0 (!%p169_p3), %v584_v1 }
   0xe   : > { %s665_s12 = smov (!%p206_p4, %s573_s12), 3 }
   0xf   : > { %s522_s16 = smul.u32 48, %s665_s12  ;;  %s521_s25 = sshll.u32 %s665_s12, 5 }
  0x10   : > { %s228_s28 = scalar_lea.vmem %s659_s3, %s521_s25 }
  0x11   : > { %s219_s19 = scalar_lea.vmem %s657_s1, %s522_s16  ;;  %s632_s22 = scalar_lea.vmem %s656_s0, %s522_s16 }
  0x12   : > { %v249_v2 = vld [vmem:[%s219_s19] sm:$0xff]  ;;  %v250_v3 = vld [vmem:[%s219_s19 + $0x8] sm:$0xff]  ;;  %v251_v4 = vld [vmem:[%s219_s19 + $0x10] sm:$0xff] }
  0x13   : > { %298 = vperm.xlu1 %550, %v249_v2   ;;  %257 = vperm.xlu0 %549, %v249_v2   ;;  %v252_v5 = vld [vmem:[%s219_s19 + $0x18] sm:$0xff]  ;;  %v254_v6 = vld [vmem:[%s219_s19 + $0x28] sm:$0xff]  ;;  %v253_v7 = vld [vmem:[%s219_s19 + $0x20] sm:$0xff] }
  0x14   : > { %v231_v10 = vld [vmem:[%s632_s22] sm:$0xff]  ;;  %v232_v14 = vld [vmem:[%s632_s22 + $0x8] sm:$0xff]  ;;  %v234_v16 = vld [vmem:[%s632_s22 + $0x18] sm:$0xff] }
  0x15   : > { %v237_v11 = vunpack.c.l.bf16 %v231_v10  ;;  %v238_v12 = vunpack.c.h.bf16 %v231_v10  ;;  %v239_v17 = vunpack.c.l.bf16 %v232_v14  ;;  %v240_v18 = vunpack.c.h.bf16 %v232_v14  ;;  %v233_v21 = vld [vmem:[%s632_s22 + $0x10] sm:$0xff]  ;;  %v235_v48 = vld [vmem:[%s632_s22 + $0x20] sm:$0xff]  ;;  %v236_v56 = vld [vmem:[%s632_s22 + $0x28] sm:$0xff] }
  0x16   : > { %v243_v23 = vunpack.c.l.bf16 %v234_v16  ;;  %v244_v24 = vunpack.c.h.bf16 %v234_v16  ;;  %v241_v28 = vunpack.c.l.bf16 %v233_v21  ;;  %v242_v29 = vunpack.c.h.bf16 %v233_v21  ;;  %v558_v16 = vld [vmem:[%s658_s2] sm:$0xff]  }
  0x17   : > { %302 = vperm.xlu1 %550, %v250_v3   ;;  %552 = vset.pattern.permute.xlu0 %v583_v0  ;;  %v245_v57 = vunpack.c.l.bf16 %v235_v48  ;;  %v246_v58 = vunpack.c.h.bf16 %v235_v48  ;;  %v247_v61 = vunpack.c.l.bf16 %v236_v56  ;;  %v248_v62 = vunpack.c.h.bf16 %v236_v56 }
  0x18   : > { %306 = vperm.xlu0 %552, %v251_v4  }
  0x1b   : > { %551 = vset.pattern.permute.xlu1 %v584_v1 }
  0x1c   : > { %272 = vperm.xlu1 %551, %v252_v5   ;;  %553 = vset.pattern.permute.xlu0 %v584_v1 }
  0x1d   : > { %262 = vperm.xlu0 %553, %v250_v3  }
  0x20   : > { %554 = vset.pattern.permute.xlu1 %v583_v0 }
  0x21   : > { %310 = vperm.xlu1 %554, %v252_v5   ;;  %267 = vperm.xlu0 %553, %v251_v4  }
  0x25   : > { %555 = vset.pattern.permute.xlu1 %v584_v1  ;;  %282 = vperm.xlu0 %553, %v254_v6  }
  0x26   : > { %277 = vperm.xlu1 %555, %v253_v7  }
  0x29   : > { %557 = vset.pattern.permute.xlu0 %v583_v0 }
  0x2a   : > { %556 = vset.pattern.permute.xlu1 %v583_v0 }
  0x2b   : > { %314 = vperm.xlu1 %556, %v253_v7  }
  0x2f   : > { %318 = vperm.xlu1 %556, %v254_v6  }
  0x92   : > { %v299_v8 = vpop.permute.xlu1 %298  ;;  %v258_v9 = vpop.permute.xlu0 %257 }
  0x93   : > { %v285_v19 = vmul.f32 %v258_v9, %v237_v11  ;;  %v286_v20 = vmul.f32 %v258_v9, %v238_v12 }
  0x95   : > { %v321_v30 = vadd.f32 %v299_v8, %v285_v19  ;;  %v322_v31 = vadd.f32 %v299_v8, %v286_v20 }
  0x96   : > { %v303_v13 = vpop.permute.xlu1 %302 }
  0x97   : > { %v307_v15 = vpop.permute.xlu0 %306  ;;  %v334_v42 = vmax.f32 %v322_v31, 0.0  ;;  %v333_v44 = vmax.f32 %v321_v30, 0.0 }
  0x9b   : > { %v273_v22 = vpop.permute.xlu1 %272 }
  0x9c   : > { %v263_v25 = vpop.permute.xlu0 %262  ;;  %v291_v32 = vmul.f32 %v273_v22, %v243_v23  ;;  %v292_v33 = vmul.f32 %v273_v22, %v244_v24 }
  0x9d   : > { %v287_v26 = vmul.f32 %v263_v25, %v239_v17  ;;  %v288_v27 = vmul.f32 %v263_v25, %v240_v18 }
  0x9f   : > { %v323_v34 = vadd.f32 %v303_v13, %v287_v26  ;;  %v324_v35 = vadd.f32 %v303_v13, %v288_v27 }
  0xa0   : > { %v311_v36 = vpop.permute.xlu1 %310  ;;  %v268_v37 = vpop.permute.xlu0 %267 }
  0xa1   : > { %v327_v38 = vadd.f32 %v311_v36, %v291_v32  ;;  %v328_v39 = vadd.f32 %v311_v36, %v292_v33  ;;  %v289_v40 = vmul.f32 %v268_v37, %v241_v28  ;;  %v290_v41 = vmul.f32 %v268_v37, %v242_v29 }
  0xa2   : > { %v336_v43 = vmax.f32 %v324_v35, 0.0  ;;  %v335_v45 = vmax.f32 %v323_v34, 0.0 }
  0xa3   : > { %v325_v46 = vadd.f32 %v307_v15, %v289_v40  ;;  %v326_v47 = vadd.f32 %v307_v15, %v290_v41  ;;  %v339_v51 = vmax.f32 %v327_v38, 0.0  ;;  %v340_v52 = vmax.f32 %v328_v39, 0.0 }
  0xa4   : > { %v348_v49 = vpack.c.bf16 %v336_v43, %v334_v42  ;;  %v347_v50 = vpack.c.bf16 %v335_v45, %v333_v44  ;;  %v283_v63 = vpop.permute.xlu0 %282 }
  0xa5   : > { %v337_v53 = vmax.f32 %v325_v46, 0.0  ;;  %v338_v54 = vmax.f32 %v326_v47, 0.0  ;;  %v278_v55 = vpop.permute.xlu1 %277  ;;  %v295_v3 = vmul.f32 %v283_v63, %v247_v61  ;;  %v296_v4 = vmul.f32 %v283_v63, %v248_v62 }
  0xa6   : > { %362 = vmatprep.subr.bf16.mxu0 %v348_v49  ;;  %v293_v1 = vmul.f32 %v278_v55, %v245_v57  ;;  %v294_v2 = vmul.f32 %v278_v55, %v246_v58 }
  0xa7   : > { %363 = vmatpush1.bf16.msra.mxu0 %v347_v50  ;;  %v350_v59 = vpack.c.bf16 %v340_v52, %v338_v54  ;;  %v349_v60 = vpack.c.bf16 %v339_v51, %v337_v53 }
  0xa9   : > { %364 = vmatprep.subr.bf16.mxu0 %v350_v59 }
  0xaa   : > { %v315_v0 = vpop.permute.xlu1 %314 }
  0xab   : > { %365 = vmatpush1.bf16.msra.mxu0 %v349_v60  ;;  %v329_v5 = vadd.f32 %v315_v0, %v293_v1  ;;  %v330_v6 = vadd.f32 %v315_v0, %v294_v2 }
  0xad   : > { %v341_v10 = vmax.f32 %v329_v5, 0.0  ;;  %v342_v11 = vmax.f32 %v330_v6, 0.0 }
  0xae   : > { %v319_v7 = vpop.permute.xlu1 %318 }
  0xaf   : > { %v331_v8 = vadd.f32 %v319_v7, %v295_v3  ;;  %v332_v9 = vadd.f32 %v319_v7, %v296_v4 }
  0xb1   : > { %v343_v12 = vmax.f32 %v331_v8, 0.0  ;;  %v344_v13 = vmax.f32 %v332_v9, 0.0 }
  0xb3   : > { %v351_v14 = vpack.c.bf16 %v343_v12, %v341_v10  ;;  %v352_v15 = vpack.c.bf16 %v344_v13, %v342_v11 }
  0xb5   : > { %366 = vmatprep.subr.bf16.mxu0 %v352_v15 }
  0xb6   : > { %367 = vmatpush1.bf16.msra.mxu0 %v351_v14 }
  0xb9   : > { %518 = vmatmul.mubr.msk.bf16.vlgmr.msra.gmra.mrb[0].mxu0 %vm358_vm0, %v558_v16 }
 0x18c   : > { %v396_v17 = vpop.f32.mrb[0].mxu0 }
 0x18d   : > { %405 = vst [vmem:[%s228_s28] sm:$0xff] %v396_v17  ;;  %v398_v18 = vpop.f32.mrb[1].mxu0 }
 0x18e   : > { %406 = vst [vmem:[%s228_s28 + $0x8] sm:$0xff] %v398_v18  ;;  %v400_v19 = vpop.f32.mrb[2].mxu0 }
 0x18f   : > { %407 = vst [vmem:[%s228_s28 + $0x10] sm:$0xff] %v400_v19  ;;  %v402_v20 = vpop.f32.mrb[3].mxu0 }
 0x190   : > { %408 = vst [vmem:[%s228_s28 + $0x18] sm:$0xff] %v402_v20 }
 0x191 PF: > { %s13_s14 = sadd.s32 1, %s581_s14   ;;  %s660_s12 = smov %s577_s13 }
 0x192   : > { %p10_p5 = scmp.ge.s32.totalorder %s13_s14, 6   ;;  %s661_s13 = smov %s663_s15 }
 0x194   :  { %12 = sbr.rel (!%p10_p5) target bundleno = 2 (0x2), region = 65 }

// kernel: pstconv_forward.2
= control target key start
LH: loop header
LB: loop body
LE: loop exit
PB: predicated region body
PF: predicated region fallthrough
CT: control target
= control target key end

     0   :  { %s1367_s18 = smov 0   ;;  %s1369_s19 = smov 0   ;;  %s1545_s0 = inlined_call_operand.vmem [shape: bf16[2,12,16,512], index: 0, kind: input, shape index: {}]   ;;  %s1546_s1 = inlined_call_operand.vmem [shape: bf16[2,4,8,128], index: 1, kind: input, shape index: {}]   ;;  %s1547_s2 = inlined_call_operand.vmem [shape: bf16[32,16], index: 2, kind: input, shape index: {}]   ;;  %s1548_s3 = inlined_call_operand.vmem [shape: bf16[16,8], index: 3, kind: input, shape index: {}]   ;;  %s1549_s4 = inlined_call_operand.vmem [shape: bf16[4,48,256], index: 4, kind: output, shape index: {0}]   ;;  %s1550_s5 = inlined_call_operand.vmem [shape: f32[12,1,16,2], index: 5, kind: output, shape index: {1}]  }
   0x1   :  { %s1371_s20 = smov 0   ;;  %s1373_s21 = smov 0  }
   0x2   :  { %s1375_s22 = smov 0   ;;  %s1377_s23 = smov 0  }
   0x3   :  { %s1379_s24 = smov 0   ;;  %s1381_s25 = smov 0  }
   0x4   :  { %s1383_s26 = smov 0  }
   0x5 LB: > { %s31_s27 = sadd.s32 1, %s1324_s24  ;;  %s35_s28 = sadd.s32 1, %s1328_s25  ;;  %s1332_s26 = sphi %s1383_s26, %s16_s26   ;;  %s1328_s25 = sphi %s1381_s25, %s1560_s25   ;;  %s1324_s24 = sphi %s1379_s24, %s1559_s24   ;;  %s1320_s23 = sphi %s1377_s23, %s1558_s23   ;;  %s1316_s22 = sphi %s1375_s22, %s1557_s22   ;;  %s1312_s21 = sphi %s1373_s21, %s1556_s21   ;;  %s1308_s20 = sphi %s1371_s20, %s1555_s20   ;;  %s1304_s19 = sphi %s1369_s19, %s1554_s19   ;;  %s1300_s18 = sphi %s1367_s18, %s1553_s18  }
   0x6   : > { %p33_p0 = scmp.ge.s32.totalorder %s31_s27, 3  ;;  %p55_p1 = scmp.ne.s32.totalorder %s1312_s21, %s1308_s20 }
   0x7   : > { %s39_s29 = smul.u32 3, %s1328_s25  ;;  %p56_p2 = scmp.eq.s32.totalorder %s1332_s26, 0 }
   0x8   : > { %s1562_s27 = smov (%p33_p0, %s31_s27), 0  ;;  %s1564_s28 = smov (!%p33_p0, %s35_s28), %s1328_s25 }
   0x9   : > { %p37_p3 = scmp.ge.s32.totalorder %s1564_s28, 4  ;;  %p1421_p4 = por %p56_p2, %p55_p1 }
   0xa   : > { %p83_p5 = scmp.ne.s32.totalorder %s1304_s19, %s1300_s18  ;;  %s40_s6 = sadd.s32 %s1324_s24, %s39_s29 }
   0xb   : > { %s1566_s28 = smov (%p37_p3, %s1564_s28), 0  ;;  %s76_s11 = sadd.s32 1, %s1304_s19 }
   0xc   : > { %p1430_p6 = por %p83_p5, %p56_p2  ;;  %s41_s8 = smul.u32 3, %s1566_s28 }
   0xd   : > { %s72_s9 = ssub.s32 %s1328_s25, %s1566_s28  ;;  %s48_s13 = sadd.s32 1, %s1312_s21 }
   0xe   : > { %p74_p7 = scmp.eq.s32.totalorder %s72_s9, 0  ;;  %s42_s10 = sadd.s32 %s41_s8, %s1562_s27 }
   0xf   : > { %s44_s12 = ssub.s32 %s40_s6, %s42_s10  ;;  %p1103_p9 = scmp.ge.s32.totalorder %s1332_s26, 12 }
  0x10   : > { %p46_p8 = scmp.eq.s32.totalorder %s44_s12, 0 }
  0x11   : > { %s1441_s14 = scalar_select %p74_p7, %s1304_s19, %s76_s11  }
  0x12   : > { %s1444_s15 = scalar_select %p46_p8, %s1312_s21, %s48_s13  }
  0x13   : > { %219 = sbr.rel (%p1103_p9) target bundleno = 41 (0x29), region = 24 }
  0x1a   : > { %222 = sbr.rel (!%p1421_p4) target bundleno = 34 (0x22), region = 28  ;;  %s224_s16 = sand.u32 (%p1421_p4), 1, %s1312_s21  }
  0x1b   : > { %s1149_s17 = sshll.u32 (%p1421_p4), %s40_s6, 5  ;;  %s1104_s29 = sshll.u32 (%p1421_p4), %s224_s16, 6 }
  0x1c   : > { %s234_s10 = scalar_lea.vmem (%p1421_p4), %s1545_s0, %s1149_s17  ;;  %s226_s11 = scalar_lea.vmem (%p1421_p4), [#allocation2], %s1104_s29 }
  0x1d   : > { %v247_v0 = vld [vmem:[%s234_s10] sm:$0xff] (%p1421_p4)  ;;  %v249_v1 = vld [vmem:[%s234_s10 + $0x8] sm:$0xff] (%p1421_p4)  ;;  %v251_v2 = vld [vmem:[%s234_s10 + $0x10] sm:$0xff] (%p1421_p4) }
  0x1e   : > { %248 = vst [vmem:[%s226_s11] sm:$0xff] (%p1421_p4), %v247_v0  ;;  %250 = vst [vmem:[%s226_s11 + $0x8] sm:$0xff] (%p1421_p4), %v249_v1  ;;  %v253_v3 = vld [vmem:[%s234_s10 + $0x18] sm:$0xff] (%p1421_p4)  ;;  %v255_v4 = vld [vmem:[%s234_s10 + $0x180] sm:$0xff] (%p1421_p4) }
  0x1f   : > { %252 = vst [vmem:[%s226_s11 + $0x10] sm:$0xff] (%p1421_p4), %v251_v2  ;;  %v257_v5 = vld [vmem:[%s234_s10 + $0x188] sm:$0xff] (%p1421_p4)  ;;  %254 = vst [vmem:[%s226_s11 + $0x18] sm:$0xff] (%p1421_p4), %v253_v3  ;;  %v259_v6 = vld [vmem:[%s234_s10 + $0x190] sm:$0xff] (%p1421_p4) }
  0x20   : > { %256 = vst [vmem:[%s226_s11 + $0x20] sm:$0xff] (%p1421_p4), %v255_v4  ;;  %258 = vst [vmem:[%s226_s11 + $0x28] sm:$0xff] (%p1421_p4), %v257_v5  ;;  %v261_v7 = vld [vmem:[%s234_s10 + $0x198] sm:$0xff] (%p1421_p4) }
  0x21   : > { %260 = vst [vmem:[%s226_s11 + $0x30] sm:$0xff] %v259_v6  ;;  %262 = vst [vmem:[%s226_s11 + $0x38] sm:$0xff] %v261_v7 }
  0x22 PF: > { %268 = sbr.rel (!%p1430_p6) target bundleno = 41 (0x29), region = 51  ;;  %s270_s30 = sand.u32 (%p1430_p6), 1, %s1304_s19  }
  0x23   : > { %s1108_s6 = sshll.u32 (%p1430_p6), %s1328_s25, 2  ;;  %s1107_s12 = sshll.u32 (%p1430_p6), %s270_s30, 3 }
  0x24   : > { %s277_s17 = scalar_lea.vmem (%p1430_p6), %s1546_s1, %s1108_s6  ;;  %s272_s29 = scalar_lea.vmem (%p1430_p6), [#allocation3], %s1107_s12 }
  0x25   : > { %v293_v8 = vld [vmem:[%s277_s17] sm:$0xf] (%p1430_p6)  ;;  %v295_v9 = vld [vmem:[%s277_s17 + $0x10] sm:$0xf] (%p1430_p6) }
  0x26   : > { %294 = vst [vmem:[%s272_s29] sm:$0xf] (%p1430_p6), %v293_v8  ;;  %296 = vst [vmem:[%s272_s29 + $0x4] sm:$0xf] (%p1430_p6), %v295_v9 }
  0x29 PF: > { %p1109_p10 = scmp.ge.s32.totalorder %s1332_s26, 1  ;;  %p322_p11 = scmp.lt.s32.totalorder %s1332_s26, 13 }
  0x2b   : > { %p323_p12 = pnand %p1109_p10, %p322_p11 }
  0x2c   : > { %s329_s7 = sand.u32 (!%p323_p12), 1, %s1308_s20   ;;  %v1334_v10 = vmov (!%p323_p12), 0   ;;  %s336_s8 = sand.u32 (!%p323_p12), 1, %s1300_s18   ;;  %vm584_vm0 = vcmask (!%p323_p12), 1043456   ;;  %v1253_v15 = vld [vmem:[%s1547_s2] sm:$0xff] (!%p323_p12)   ;;  %vm461_vm1 = vcmask (!%p323_p12), 130048  }
  0x2d   : > { %326 = sbr.rel (%p323_p12) target bundleno = 459 (0x1cb), region = 92  ;;  %s1110_s9 = sshll.u32 (!%p323_p12), %s329_s7, 6  ;;  %500 = vmatprep.mubr.bf16.mxu0 (!%p323_p12), %v1334_v10  ;;  %553 = vmatprep.mubr.bf16.mxu1 (!%p323_p12), %v1334_v10  ;;  %v1335_v19 = vmov (!%p323_p12), 0.0   ;;  %v1257_v22 = vld [vmem:[%s1547_s2 + $0x8] sm:$0xff] (!%p323_p12)   ;;  %vm1336_vm2 = vmmov (!%p323_p12), 0   ;;  %v1258_v24 = vld [vmem:[%s1548_s3] sm:$0xff] (!%p323_p12)  }
  0x2e   : > { %s1464_s10 = sshll.u32 (!%p323_p12), %s336_s8, 3  ;;  %s1466_s11 = scalar_lea.vmem (!%p323_p12), [#allocation2], %s1110_s9  ;;  %vm580_vm3 = vcmask (!%p323_p12), 64512   ;;  %vm898_vm4 = vcmask (!%p323_p12), 7168   ;;  %vm901_vm5 = vcmask (!%p323_p12), 15368  }
  0x2f   : > { %v1247_v11 = vld [vmem:[%s1466_s11 + $0x4] ss:$16 sps:$4 sm:$0xff] (!%p323_p12)   ;;  %v1249_v12 = vld [vmem:[%s1466_s11 + $0xc] ss:$16 sps:$4 sm:$0xff] (!%p323_p12)   ;;  %v1251_v13 = vld [vmem:[%s1466_s11] ss:$16 sps:$4 sm:$0xff] (!%p323_p12)  }
  0x30   : > { %468 = vmatprep.subr.bf16.mxu0 (!%p323_p12), %v1247_v11  ;;  %v1252_v14 = vld [vmem:[%s1466_s11 + $0x8] ss:$16 sps:$4 sm:$0xff] (!%p323_p12)   ;;  %521 = vmatprep.subr.bf16.mxu1 (!%p323_p12), %v1249_v12  ;;  %v1256_v16 = vld [vmem:[%s1466_s11 + $0x24] ss:$16 sps:$4 sm:$0xff] (!%p323_p12)   ;;  %v1254_v17 = vld [vmem:[%s1466_s11 + $0x20] ss:$16 sps:$4 sm:$0xff] (!%p323_p12)  }
  0x31   : > { %469 = vmatpush1.bf16.msra.mxu0 (!%p323_p12), %v1251_v13  ;;  %522 = vmatpush1.bf16.msra.mxu1 (!%p323_p12), %v1252_v14  ;;  %s338_s30 = scalar_lea.vmem (!%p323_p12), [#allocation3], %s1464_s10  ;;  %v1261_v21 = vld [vmem:[%s1466_s11 + $0x2c] ss:$16 sps:$4 sm:$0xff] (!%p323_p12)   ;;  %v1259_v25 = vld [vmem:[%s1466_s11 + $0x28] ss:$16 sps:$4 sm:$0xff] (!%p323_p12)   ;;  %s1112_s17 = sshll.u32 (!%p323_p12), %s1316_s22, 1 }
  0x32   : > { %v574_v18 = vld [vmem:[%s338_s30] sm:$0xf] (!%p323_p12)  ;;  %700 = vmatprep.subr.bf16.mxu1 (!%p323_p12), %v1256_v16  ;;  %1159 = vmatprep.subr.bf16.mxu0 (!%p323_p12), %v1335_v19  ;;  %v1143_v23 = vld [vmem:[%s338_s30 + $0x4] sm:$0xf] (!%p323_p12)  ;;  %p393_p13 = scmp.lt.s32.totalorder (!%p323_p12), %s1320_s23, 3  ;;  %p395_p0 = scmp.lt.s32.totalorder (!%p323_p12), %s1112_s17, 5 }
  0x33   : > { %v586_v20 = vsel (!%p323_p12), %vm584_vm0, %v574_v18, 0  ;;  %v809_v26 = vsel (!%p323_p12), %vm584_vm0, %v1143_v23, 0  ;;  %s407_s30 = smul.u32 (!%p323_p12), 3, %s1320_s23 }
  0x34   : > { %1123 = vmatmul.mubr.msk.bf16.vlgmr.msra.gmra.mrb[0].mxu0 %vm461_vm1, %v1253_v15  ;;  %1125 = vmatmul.mubr.msk.bf16.vlgmr.msra.gmra.mrb[0].mxu1 %vm461_vm1, %v1253_v15  ;;  %s394_s29 = scalar_select %p393_p13, %s1320_s23, 3 }
  0x35   : > { %701 = vmatpush1.bf16.msra.mxu1 %v1254_v17  ;;  %1160 = vmatpush3.bf16.msra.mxu0 %v586_v20  ;;  %s1568_s17 = smov (!%p395_p0, %s1112_s17), 5  ;;  %s408_s6 = sadd.s32 %s1316_s22, %s407_s30 }
  0x36   : > { %510 = vmatprep.mubr.bf16.mxu0 %v1334_v10  ;;  %563 = vmatprep.mubr.bf16.mxu1 %v1334_v10  ;;  %s1171_s7 = smul.u32 12, %s394_s29  ;;  %s1113_s9 = sshll.u32 %s1568_s17, 1 }
  0x37   : > { %1165 = vmatprep.subr.bf16.mxu1 %v1335_v19  ;;  %753 = vmatprep.subr.bf16.mxu0 %v1261_v21  ;;  %p409_p1 = scmp.lt.s32.totalorder %s408_s6, 11 }
  0x38   : > { %s402_s8 = sadd.s32 %s1171_s7, %s1113_s9 }
  0x39   : > { %s1114_s10 = sshll.u32 %s402_s8, 2  ;;  %s1570_s6 = smov (!%p409_p1, %s408_s6), 11 }
  0x3a   : > { %s1506_s20 = scalar_lea.vmem %s1549_s4, %s1114_s10  ;;  %s1150_s12 = sshll.u32 %s1570_s6, 4 }
  0x3b   : > { %s417_s17 = scalar_lea.vmem %s1550_s5, %s1150_s12 }
  0x3c   : > { %1124 = vmatmul.mubr.msk.bf16.gmra.mrb[4].mxu0 %vm461_vm1, %v1257_v22  ;;  %1126 = vmatmul.mubr.msk.bf16.gmra.mrb[4].mxu1 %vm461_vm1, %v1257_v22 }
  0x3d   : > { %1161 = vmatprep.mubr.msk.bf16.mxu0 %vm1336_vm2, %v1335_v19  ;;  %732 = vmatprep.mubr.bf16.mxu1 %v1334_v10 }
  0x44   : > { %1162 = vmatmul.mubr.msk.bf16.vlgmr.msra.gmra.mrb[8].mxu0 %vm580_vm3, %v1258_v24  ;;  %1139 = vmatmul.mubr.msk.bf16.vlgmr.msra.gmra.mrb[8].mxu1 %vm461_vm1, %v1253_v15 }
  0x45   : > { %1166 = vmatpush3.bf16.msra.mxu1 %v809_v26  ;;  %754 = vmatpush1.bf16.msra.mxu0 %v1259_v25 }
  0x46   : > { %742 = vmatprep.mubr.bf16.mxu1 %v1334_v10  ;;  %785 = vmatprep.mubr.bf16.mxu0 %v1334_v10 }
  0x4c   : > { %1140 = vmatmul.mubr.msk.bf16.gmra.mrb[12].mxu1 %vm461_vm1, %v1257_v22  ;;  %1141 = vmatmul.mubr.msk.bf16.vlgmr.msra.gmra.mrb[12].mxu0 %vm461_vm1, %v1253_v15 }
  0x4d   : > { %1167 = vmatprep.mubr.msk.bf16.mxu1 %vm1336_vm2, %v1335_v19  ;;  %795 = vmatprep.mubr.bf16.mxu0 %v1334_v10 }
  0x54   : > { %1168 = vmatmul.mubr.msk.bf16.vlgmr.msra.gmra.mrb[16].mxu1 %vm580_vm3, %v1258_v24  ;;  %1142 = vmatmul.mubr.msk.bf16.gmra.mrb[16].mxu0 %vm461_vm1, %v1257_v22 }
 0x107   : > { %v555_v27 = vpop.f32.mrb[0].mxu1  ;;  %v502_v28 = vpop.f32.mrb[0].mxu0 }
 0x108   : > { %v557_v29 = vpop.f32.mrb[1].mxu1  ;;  %v504_v30 = vpop.f32.mrb[1].mxu0 }
 0x109   : > { %v559_v31 = vpop.f32.mrb[2].mxu1  ;;  %v506_v32 = vpop.f32.mrb[2].mxu0 }
 0x10a   : > { %v561_v33 = vpop.f32.mrb[3].mxu1  ;;  %v508_v34 = vpop.f32.mrb[3].mxu0 }
 0x10f   : > { %v565_v35 = vpop.f32.mrb[4].mxu1  ;;  %v512_v36 = vpop.f32.mrb[4].mxu0 }
 0x110   : > { %v567_v37 = vpop.f32.mrb[5].mxu1  ;;  %v514_v38 = vpop.f32.mrb[5].mxu0 }
 0x111   : > { %v569_v39 = vpop.f32.mrb[6].mxu1  ;;  %v516_v40 = vpop.f32.mrb[6].mxu0 }
 0x112   : > { %v571_v41 = vpop.f32.mrb[7].mxu1  ;;  %v518_v42 = vpop.f32.mrb[7].mxu0 }
 0x117   : > { %v622_v43 = vpop.f32.mrb[8].mxu0  ;;  %v734_v44 = vpop.f32.mrb[8].mxu1 }
 0x118   : > { %v629_v45 = vsub.f32 %v502_v28, %v622_v43  ;;  %v633_v46 = vsub.f32 %v504_v30, %v622_v43  ;;  %v639_v47 = vsub.f32 %v555_v27, %v622_v43  ;;  %v645_v48 = vsub.f32 %v557_v29, %v622_v43  ;;  %v1163_v49 = vpop.f32.mrb[9].mxu0  ;;  %v736_v50 = vpop.f32.mrb[9].mxu1 }
 0x119   : > { %v625_v51 = vpop.f32.mrb[10].mxu0  ;;  %v1501_v52 = vpop.f32.mrb[10].mxu1 }
 0x11a   : > { %v631_v53 = vmul.f32 %v629_v45, %v512_v36  ;;  %v635_v54 = vmul.f32 %v633_v46, %v514_v38  ;;  %v641_v55 = vmul.f32 %v639_v47, %v565_v35  ;;  %v630_v56 = vsub.f32 %v506_v32, %v625_v51  ;;  %v740_v57 = vpop.f32.mrb[11].mxu1  ;;  %v1164_v58 = vpop.f32.mrb[11].mxu0 }
 0x11b   : > { %v634_v59 = vsub.f32 %v508_v34, %v625_v51  ;;  %v640_v60 = vsub.f32 %v559_v31, %v625_v51  ;;  %v646_v61 = vsub.f32 %v561_v33, %v625_v51  ;;  %v647_v62 = vmul.f32 %v645_v48, %v567_v37 }
 0x11c   : > { %v632_v63 = vmul.f32 %v630_v56, %v516_v40  ;;  %v637_v0 = vadd.f32 %v635_v54, %v631_v53 }
 0x11d   : > { %v636_v1 = vmul.f32 %v634_v59, %v518_v42  ;;  %v642_v2 = vmul.f32 %v640_v60, %v569_v39  ;;  %v648_v3 = vmul.f32 %v646_v61, %v571_v41 }
 0x11e   : > { %v643_v4 = vadd.f32 %v641_v55, %v637_v0 }
 0x11f   : > { %v744_v5 = vpop.f32.mrb[12].mxu1  ;;  %v787_v6 = vpop.f32.mrb[12].mxu0  ;;  %v638_v7 = vadd.f32 %v636_v1, %v632_v63 }
 0x120   : > { %v746_v8 = vpop.f32.mrb[13].mxu1  ;;  %v649_v9 = vadd.f32 %v647_v62, %v643_v4  ;;  %v789_v10 = vpop.f32.mrb[13].mxu0 }
 0x121   : > { %v748_v11 = vpop.f32.mrb[14].mxu1  ;;  %v791_v12 = vpop.f32.mrb[14].mxu0  ;;  %v644_v13 = vadd.f32 %v642_v2, %v638_v7 }
 0x122   : > { %v750_v14 = vpop.f32.mrb[15].mxu1  ;;  %661 = vadd.xlane.f32.xlu0 %v649_v9  ;;  %v1151_v15 = vpack.c.bf16 %v649_v9, %v649_v9  ;;  %v793_v16 = vpop.f32.mrb[15].mxu0  ;;  %v667_v22 = vmul.f32 %v649_v9, %v649_v9 }
 0x123   : > { %v650_v17 = vadd.f32 %v648_v3, %v644_v13 }
 0x124   : > { %659 = vst [vmem:[%s1506_s20] sm:$0xf] %v1151_v15 }
 0x125   : > { %v1152_v18 = vpack.c.bf16 %v650_v17, %v650_v17  ;;  %v668_v19 = vmul.f32 %v650_v17, %v650_v17 }
 0x126   : > { %663 = vadd.xlane.f32.xlu0 %v650_v17 }
 0x127   : > { %660 = vst [vmem:[%s1506_s20 + $0x8] sm:$0xf] %v1152_v18  ;;  %671 = vadd.xlane.f32.xlu1 %v668_v19  ;;  %v845_v20 = vpop.f32.mrb[16].mxu1  ;;  %v797_v21 = vpop.f32.mrb[16].mxu0 }
 0x128   : > { %v852_v23 = vsub.f32 %v734_v44, %v845_v20  ;;  %v856_v24 = vsub.f32 %v736_v50, %v845_v20  ;;  %v862_v25 = vsub.f32 %v787_v6, %v845_v20  ;;  %v1169_v26 = vpop.f32.mrb[17].mxu1  ;;  %v799_v27 = vpop.f32.mrb[17].mxu0  ;;  %v868_v28 = vsub.f32 %v789_v10, %v845_v20 }
 0x129   : > { %v848_v29 = vpop.f32.mrb[18].mxu1  ;;  %v801_v30 = vpop.f32.mrb[18].mxu0 }
 0x12a   : > { %v854_v31 = vmul.f32 %v852_v23, %v744_v5  ;;  %v858_v32 = vmul.f32 %v856_v24, %v746_v8  ;;  %v864_v33 = vmul.f32 %v862_v25, %v797_v21  ;;  %v870_v34 = vmul.f32 %v868_v28, %v799_v27  ;;  %v1170_v35 = vpop.f32.mrb[19].mxu1  ;;  %669 = vadd.xlane.f32.xlu0 %v667_v22  ;;  %v803_v36 = vpop.f32.mrb[19].mxu0 }
 0x12b   : > { %v853_v37 = vsub.f32 %v1501_v52, %v848_v29  ;;  %v857_v38 = vsub.f32 %v740_v57, %v848_v29  ;;  %v863_v39 = vsub.f32 %v791_v12, %v848_v29  ;;  %v869_v40 = vsub.f32 %v793_v16, %v848_v29 }
 0x12c   : > { %v860_v41 = vadd.f32 %v858_v32, %v854_v31 }
 0x12d   : > { %v855_v42 = vmul.f32 %v853_v37, %v748_v11  ;;  %v859_v43 = vmul.f32 %v857_v38, %v750_v14  ;;  %v865_v44 = vmul.f32 %v863_v39, %v801_v30  ;;  %v871_v45 = vmul.f32 %v869_v40, %v803_v36 }
 0x12e   : > { %v866_v46 = vadd.f32 %v864_v33, %v860_v41 }
 0x12f   : > { %v861_v47 = vadd.f32 %v859_v43, %v855_v42 }
 0x130   : > { %v872_v48 = vadd.f32 %v870_v34, %v866_v46 }
 0x131   : > { %v867_v49 = vadd.f32 %v865_v44, %v861_v47 }
 0x132   : > { %v1153_v50 = vpack.c.bf16 %v872_v48, %v872_v48  ;;  %884 = vadd.xlane.f32.xlu1 %v872_v48  ;;  %v890_v51 = vmul.f32 %v872_v48, %v872_v48 }
 0x133   : > { %v873_v52 = vadd.f32 %v871_v45, %v867_v49 }
 0x134   : > { %882 = vst [vmem:[%s1506_s20 + $0x4] sm:$0xf] %v1153_v50  ;;  %892 = vadd.xlane.f32.xlu0 %v890_v51 }
 0x135   : > { %v1154_v53 = vpack.c.bf16 %v873_v52, %v873_v52  ;;  %v891_v54 = vmul.f32 %v873_v52, %v873_v52 }
 0x136   : > { %886 = vadd.xlane.f32.xlu1 %v873_v52 }
 0x137   : > { %883 = vst [vmem:[%s1506_s20 + $0xc] sm:$0xf] %v1154_v53 }
 0x13a   : > { %894 = vadd.xlane.f32.xlu1 %v891_v54 }
 0x1af   : > { %v662_v55 = vpop.xlane.xlu0 %661 }
 0x1b3   : > { %v664_v56 = vpop.xlane.xlu0 %663 }
 0x1b4   : > { %v672_v57 = vpop.xlane.xlu1 %671 }
 0x1b7   : > { %v670_v58 = vpop.xlane.xlu0 %669 }
 0x1bf   : > { %v885_v59 = vpop.xlane.xlu1 %884 }
 0x1c0   : > { %v888_v60 = vadd.f32 %v885_v59, %v662_v55 }
 0x1c1   : > { %v893_v61 = vpop.xlane.xlu0 %892 }
 0x1c2   : > { %899 = vst.msk [vmem:[%s417_s17] sm:$0xff] %vm898_vm4, %v888_v60  ;;  %v896_v62 = vadd.f32 %v893_v61, %v670_v58 }
 0x1c3   : > { %v887_v63 = vpop.xlane.xlu1 %886 }
 0x1c4   : > { %902 = vst.msk [vmem:[%s417_s17] sm:$0xff] %vm901_vm5, %v896_v62  ;;  %v889_v0 = vadd.f32 %v887_v63, %v664_v56 }
 0x1c6   : > { %900 = vst.msk [vmem:[%s417_s17 + $0x8] sm:$0xff] %vm898_vm4, %v889_v0 }
 0x1c7   : > { %v895_v1 = vpop.xlane.xlu1 %894 }
 0x1c8   : > { %v897_v2 = vadd.f32 %v895_v1, %v672_v57 }
 0x1ca   : > { %903 = vst.msk [vmem:[%s417_s17 + $0x8] sm:$0xff] %vm901_vm5, %v897_v2 }
 0x1cb PF: > { %s16_s26 = sadd.s32 1, %s1332_s26   ;;  %s1553_s18 = smov %s1304_s19 }
 0x1cc   : > { %p13_p2 = scmp.ge.s32.totalorder %s16_s26, 14   ;;  %s1554_s19 = smov %s1441_s14 }
 0x1cd   : > { %s1555_s20 = smov %s1312_s21  ;;  %s1556_s21 = smov %s1444_s15 }
 0x1ce   : > { %s1557_s22 = smov %s1324_s24  ;;  %s1558_s23 = smov %s1328_s25 }
 0x1cf   : > { %s1559_s24 = smov %s1562_s27  ;;  %s1560_s25 = smov %s1566_s28 }
 0x1d0   :  { %15 = sbr.rel (!%p13_p2) target bundleno = 5 (0x5), region = 157 }

</bundles_post_ra>
